<compile_context>
chip_gen: v7x
topology: tpu7x:2x2x1
jax: 0.10.0
libtpu: 0.0.40
codegen_flags: <defaults>
</compile_context>

<pallas_src>
import math

import jax
import jax.numpy as jnp
from jax import lax
from jax.experimental import pallas as pl
from jax.experimental.pallas import tpu as pltpu

D_MODEL = 32
N_HEADS = 4


def mhsa_kernel(x_ref, mask_ref, w_ref, b_ref, o_ref):
    """One grid step = one batch element.

    x_ref    : (1, S, D)  f32   activations for this batch element
    mask_ref : (1, 1, S)  int32 raw key mask (0 => masked)
    w_ref    : (D, 4D)    bf16  [wq/sqrt(dk) | wk | wv | wo]  (lane-dense slab)
    b_ref    : (1, 4D)    f32   [bq/sqrt(dk) | bk | bv | bo]
    o_ref    : (1, S, D)  f32
    """
    _, S, D = x_ref.shape
    dk = D // N_HEADS

    x2 = x_ref[...].reshape(S, D).astype(jnp.bfloat16)   # (S, D) bf16 MXU operand
    w = w_ref[...]                                        # (D, 4D) bf16
    b = b_ref[...]                                        # (1, 4D) f32

    # Fused Q/K/V (+ don't-care O columns) projection against the full 128-lane
    # slab: same number of MXU passes as a 96-lane slice, RHS stays lane-dense.
    # 1/sqrt(dk) is already folded into the Q columns (weights + bias).
    qkv = jnp.dot(x2, w, preferred_element_type=jnp.float32) + b   # (S, 4D) f32

    key_masked = mask_ref[0] == 0                         # (1, S) bool

    # Output accumulator with W_O folded in per head (block-row matmul):
    #   out = sum_h ctx_h @ wo[h*dk:(h+1)*dk, :] + bo
    # -> no VMEM ctx scratch, no masked 8-lane partial stores.
    out = b[:, 3 * D:]                                    # (1, D) f32, broadcasts

    # TODO(synk): collapse this unrolled loop into head-batched einsums
    # ('qhd,khd->hqk' / 'hqk,khd->qhd') once non-leading-batch dot_general /
    # 3-D transpose lowering is verified on Mosaic; the unrolled H=4 loop of
    # 2-D dots below is the guaranteed-to-lower form.
    for h in range(N_HEADS):                              # static unroll (H = 4)
        qh = qkv[:, h * dk:(h + 1) * dk].astype(jnp.bfloat16)            # (S, dk)
        kh = qkv[:, D + h * dk:D + (h + 1) * dk].astype(jnp.bfloat16)    # (S, dk)
        vh = qkv[:, 2 * D + h * dk:2 * D + (h + 1) * dk].astype(jnp.bfloat16)

        # scores = q @ k^T on the MXU (bf16 operands, f32 accumulation).
        s = jnp.einsum('qd,kd->qk', qh, kh,
                       preferred_element_type=jnp.float32)               # (S, S)
        # masked_fill(mask == 0, -1e9), exactly like the PyTorch module.
        s = jnp.where(key_masked, jnp.float32(-1e9), s)

        # Softmax in f32 (exact divide; VPU/EUP math kept full precision).
        m = jnp.max(s, axis=-1, keepdims=True)
        e = jnp.exp(s - m)
        p = e / jnp.sum(e, axis=-1, keepdims=True)
        # Dropout on the attention weights is identity (eval mode).

        ctx_h = jnp.dot(p.astype(jnp.bfloat16), vh,
                        preferred_element_type=jnp.float32)              # (S, dk)
        out = out + jnp.dot(ctx_h.astype(jnp.bfloat16),
                            w[h * dk:(h + 1) * dk, 3 * D:],
                            preferred_element_type=jnp.float32)          # (S, D)

    o_ref[...] = out.reshape(1, S, D).astype(o_ref.dtype)


def multi_head_self_attention(x, mask, params):
    B, S, D = x.shape
    dk = D // N_HEADS
    inv_sqrt_dk = 1.0 / math.sqrt(dk)

    # Pack the 8 parameter arrays into 2 lane-dense slabs (last dim = 4*D = 128)
    # and fold the 1/sqrt(dk) score scaling into the Q columns (weights + bias).
    # Weights go in as bf16 (MXU-native, half the DMA); biases stay f32 and are
    # added after the f32-accumulated matmuls.
    w_slab = jnp.concatenate(
        [params['wq'] * inv_sqrt_dk, params['wk'], params['wv'], params['wo']],
        axis=1).astype(jnp.bfloat16)                       # (D, 4D)
    b_slab = jnp.concatenate(
        [params['bq'] * inv_sqrt_dk, params['bk'], params['bv'], params['bo']],
        axis=1).astype(jnp.float32)                        # (1, 4D)

    # TODO(synk): at large S, switch the in-kernel attention to a KV-tiled
    # (flash / online-softmax) loop and set vmem_limit_bytes explicitly — the
    # full (S, S) f32 scores per head hit the VMEM wall first on v7x (64 MiB
    # physical, 32 MiB scoped default) and v5e (16 MiB scoped default).
    return pl.pallas_call(
        mhsa_kernel,
        out_shape=jax.ShapeDtypeStruct((B, S, D), x.dtype),
        grid=(B,),                                         # real batch axis
        in_specs=[
            pl.BlockSpec((1, S, D), lambda b: (b, 0, 0)),  # x
            pl.BlockSpec((1, 1, S), lambda b: (b, 0, 0)),  # raw int32 mask
            pl.BlockSpec(w_slab.shape, lambda b: (0, 0)),  # packed weights (resident)
            pl.BlockSpec(b_slab.shape, lambda b: (0, 0)),  # packed biases  (resident)
        ],
        out_specs=pl.BlockSpec((1, S, D), lambda b: (b, 0, 0)),
        compiler_params=pltpu.CompilerParams(
            dimension_semantics=("parallel",)),            # 2nd TC on v7x
    )(x, mask.astype(jnp.int32), w_slab, b_slab)


def mhsa_reference(x, mask, p):
    """Pure-JAX reference mirroring the PyTorch forward (dropout = identity)."""
    B, S, D = x.shape
    dk = D // N_HEADS
    q = x @ p['wq'] + p['bq'][0]
    k = x @ p['wk'] + p['bk'][0]
    v = x @ p['wv'] + p['bv'][0]
    qh = q.reshape(B, S, N_HEADS, dk).transpose(0, 2, 1, 3)
    kh = k.reshape(B, S, N_HEADS, dk).transpose(0, 2, 1, 3)
    vh = v.reshape(B, S, N_HEADS, dk).transpose(0, 2, 1, 3)
    sc = jnp.einsum('bhqd,bhkd->bhqk', qh, kh) / math.sqrt(dk)
    sc = jnp.where(mask[:, None, :, :] == 0, -1e9, sc)
    aw = jax.nn.softmax(sc, axis=-1)
    ctx = jnp.einsum('bhqk,bhkd->bhqd', aw, vh).transpose(0, 2, 1, 3).reshape(B, S, D)
    return ctx @ p['wo'] + p['bo'][0]


if __name__ == "__main__":
    B, S = 2, 8
    key = jax.random.PRNGKey(0)
    keys = jax.random.split(key, 10)

    def w(k, shape, scale=0.05):
        return (scale * jax.random.normal(k, shape)).astype(jnp.float32)

    params = {
        'wq': w(keys[0], (D_MODEL, D_MODEL)), 'bq': w(keys[1], (1, D_MODEL)),
        'wk': w(keys[2], (D_MODEL, D_MODEL)), 'bk': w(keys[3], (1, D_MODEL)),
        'wv': w(keys[4], (D_MODEL, D_MODEL)), 'bv': w(keys[5], (1, D_MODEL)),
        'wo': w(keys[6], (D_MODEL, D_MODEL)), 'bo': w(keys[7], (1, D_MODEL)),
    }

    x = jax.random.normal(keys[8], (B, S, D_MODEL), dtype=jnp.float32)
    mask = jnp.ones((B, 1, S), dtype=jnp.int32)
    mask = mask.at[1, 0, S - 2:].set(0)      # pad out the last 2 keys of batch 1

    out = multi_head_self_attention(x, mask, params)
    out = jax.block_until_ready(out)

    ref = mhsa_reference(x, mask, params)
    assert out.shape == (B, S, D_MODEL)
    err = jnp.max(jnp.abs(out - ref))
    # bf16 MXU operands (f32 accumulation) vs f32 reference -> ~1e-3 level error.
    assert jnp.allclose(out, ref, atol=1e-2, rtol=1e-2), f"max abs err {err}"
    print("KERNEL_OK")
</pallas_src>

<mosaic_0001>
module attributes {stable_mosaic.version = 11 : i64} {
  func.func @mhsa_kernel(%arg0: i32, %arg1: memref<1x8x32xf32, #tpu.memory_space<vmem>>, %arg2: memref<1x1x8xi32, #tpu.memory_space<vmem>>, %arg3: memref<32x128xbf16, #tpu.memory_space<vmem>>, %arg4: memref<1x128xf32, #tpu.memory_space<vmem>>, %arg5: memref<1x8x32xf32, #tpu.memory_space<vmem>>) attributes {dimension_semantics = [#tpu.dimension_semantics<parallel>], iteration_bounds = array<i64: 2>, scalar_prefetch = 0 : i64, scratch_operands = 0 : i64, tpu.core_type = #tpu.core_type<tc>, window_params = [{transform_indices = @transform_0, window_bounds = array<i64: 1, 8, 32>}, {transform_indices = @transform_1, window_bounds = array<i64: 1, 1, 8>}, {pipeline_mode = #tpu.pipeline_mode<synchronous>, transform_indices = @transform_2, window_bounds = array<i64: 32, 128>}, {pipeline_mode = #tpu.pipeline_mode<synchronous>, transform_indices = @transform_3, window_bounds = array<i64: 1, 128>}, {transform_indices = @transform_4, window_bounds = array<i64: 1, 8, 32>}]} {
    %c0 = arith.constant 0 : index
    %c0_0 = arith.constant 0 : index
    %c0_1 = arith.constant 0 : index
    %0 = vector.load %arg1[%c0, %c0_0, %c0_1] : memref<1x8x32xf32, #tpu.memory_space<vmem>>, vector<1x8x32xf32>
    %1 = vector.shape_cast %0 : vector<1x8x32xf32> to vector<8x32xf32>
    %2 = arith.truncf %1 : vector<8x32xf32> to vector<8x32xbf16>
    %c0_2 = arith.constant 0 : index
    %c0_3 = arith.constant 0 : index
    %3 = vector.load %arg3[%c0_2, %c0_3] : memref<32x128xbf16, #tpu.memory_space<vmem>>, vector<32x128xbf16>
    %c0_4 = arith.constant 0 : index
    %c0_5 = arith.constant 0 : index
    %4 = vector.load %arg4[%c0_4, %c0_5] : memref<1x128xf32, #tpu.memory_space<vmem>>, vector<1x128xf32>
    %cst = arith.constant dense<0.000000e+00> : vector<8x128xf32>
    %5 = tpu.matmul %2, %3, %cst {dimension_numbers = #tpu.dot_dimension_numbers<[1], [0], [0], [1], [0, 0, 1, 1], [], []>} : vector<8x32xbf16>, vector<32x128xbf16>, vector<8x128xf32> -> vector<8x128xf32>
    %6 = vector.broadcast %4 : vector<1x128xf32> to vector<8x128xf32>
    %7 = arith.addf %5, %6 : vector<8x128xf32>
    %c0_6 = arith.constant 0 : index
    %c0_7 = arith.constant 0 : index
    %c0_8 = arith.constant 0 : index
    %8 = vector.load %arg2[%c0_6, %c0_7, %c0_8] : memref<1x1x8xi32, #tpu.memory_space<vmem>>, vector<1x1x8xi32>
    %9 = vector.shape_cast %8 : vector<1x1x8xi32> to vector<1x8xi32>
    %c0_i32 = arith.constant 0 : i32
    %10 = vector.broadcast %c0_i32 : i32 to vector<1x8xi32>
    %11 = arith.cmpi eq, %9, %10 : vector<1x8xi32>
    %12 = vector.extract_strided_slice %4 {offsets = [0, 96], sizes = [1, 32], strides = [1, 1]} : vector<1x128xf32> to vector<1x32xf32>
    %13 = vector.extract_strided_slice %7 {offsets = [0, 0], sizes = [8, 8], strides = [1, 1]} : vector<8x128xf32> to vector<8x8xf32>
    %14 = arith.truncf %13 : vector<8x8xf32> to vector<8x8xbf16>
    %15 = vector.extract_strided_slice %7 {offsets = [0, 32], sizes = [8, 8], strides = [1, 1]} : vector<8x128xf32> to vector<8x8xf32>
    %16 = arith.truncf %15 : vector<8x8xf32> to vector<8x8xbf16>
    %17 = vector.extract_strided_slice %7 {offsets = [0, 64], sizes = [8, 8], strides = [1, 1]} : vector<8x128xf32> to vector<8x8xf32>
    %18 = arith.truncf %17 : vector<8x8xf32> to vector<8x8xbf16>
    "tpu.trace_start"() <{level = 10 : i32, message = "qd,kd->qk"}> : () -> ()
    %cst_9 = arith.constant dense<0.000000e+00> : vector<8x8xf32>
    %19 = tpu.matmul %14, %16, %cst_9 {dimension_numbers = #tpu.dot_dimension_numbers<[1], [1], [0], [0], [0, 0, 1, 0], [], []>} : vector<8x8xbf16>, vector<8x8xbf16>, vector<8x8xf32> -> vector<8x8xf32>
    %cst_10 = arith.constant -1.000000e+09 : f32
    "tpu.trace_stop"() : () -> ()
    %20 = vector.shape_cast %11 : vector<1x8xi1> to vector<1x8xi1>
    %21 = vector.broadcast %20 : vector<1x8xi1> to vector<8x8xi1>
    %22 = vector.broadcast %cst_10 : f32 to vector<8x8xf32>
    %23 = arith.select %21, %22, %19 : vector<8x8xi1>, vector<8x8xf32>
    %cst_11 = arith.constant dense<0xFF800000> : vector<8xf32>
    %24 = vector.multi_reduction <maximumf>, %23, %cst_11 [1] : vector<8x8xf32> to vector<8xf32>
    %25 = vector.shape_cast %24 : vector<8xf32> to vector<8x1xf32>
    %26 = vector.broadcast %25 : vector<8x1xf32> to vector<8x8xf32>
    %27 = arith.subf %23, %26 : vector<8x8xf32>
    %28 = math.exp %27 : vector<8x8xf32>
    %cst_12 = arith.constant dense<0.000000e+00> : vector<8xf32>
    %29 = vector.multi_reduction <add>, %28, %cst_12 [1] : vector<8x8xf32> to vector<8xf32>
    %30 = vector.shape_cast %29 : vector<8xf32> to vector<8x1xf32>
    %31 = vector.broadcast %30 : vector<8x1xf32> to vector<8x8xf32>
    %32 = arith.divf %28, %31 : vector<8x8xf32>
    %33 = arith.truncf %32 : vector<8x8xf32> to vector<8x8xbf16>
    %cst_13 = arith.constant dense<0.000000e+00> : vector<8x8xf32>
    %34 = tpu.matmul %33, %18, %cst_13 {dimension_numbers = #tpu.dot_dimension_numbers<[1], [0], [0], [1], [0, 0, 1, 1], [], []>} : vector<8x8xbf16>, vector<8x8xbf16>, vector<8x8xf32> -> vector<8x8xf32>
    %35 = arith.truncf %34 : vector<8x8xf32> to vector<8x8xbf16>
    %36 = vector.extract_strided_slice %3 {offsets = [0, 96], sizes = [8, 32], strides = [1, 1]} : vector<32x128xbf16> to vector<8x32xbf16>
    %cst_14 = arith.constant dense<0.000000e+00> : vector<8x32xf32>
    %37 = tpu.matmul %35, %36, %cst_14 {dimension_numbers = #tpu.dot_dimension_numbers<[1], [0], [0], [1], [0, 0, 1, 1], [], []>} : vector<8x8xbf16>, vector<8x32xbf16>, vector<8x32xf32> -> vector<8x32xf32>
    %38 = vector.broadcast %12 : vector<1x32xf32> to vector<8x32xf32>
    %39 = arith.addf %38, %37 : vector<8x32xf32>
    %40 = vector.extract_strided_slice %7 {offsets = [0, 8], sizes = [8, 8], strides = [1, 1]} : vector<8x128xf32> to vector<8x8xf32>
    %41 = arith.truncf %40 : vector<8x8xf32> to vector<8x8xbf16>
    %42 = vector.extract_strided_slice %7 {offsets = [0, 40], sizes = [8, 8], strides = [1, 1]} : vector<8x128xf32> to vector<8x8xf32>
    %43 = arith.truncf %42 : vector<8x8xf32> to vector<8x8xbf16>
    %44 = vector.extract_strided_slice %7 {offsets = [0, 72], sizes = [8, 8], strides = [1, 1]} : vector<8x128xf32> to vector<8x8xf32>
    %45 = arith.truncf %44 : vector<8x8xf32> to vector<8x8xbf16>
    "tpu.trace_start"() <{level = 10 : i32, message = "qd,kd->qk"}> : () -> ()
    %cst_15 = arith.constant dense<0.000000e+00> : vector<8x8xf32>
    %46 = tpu.matmul %41, %43, %cst_15 {dimension_numbers = #tpu.dot_dimension_numbers<[1], [1], [0], [0], [0, 0, 1, 0], [], []>} : vector<8x8xbf16>, vector<8x8xbf16>, vector<8x8xf32> -> vector<8x8xf32>
    %cst_16 = arith.constant -1.000000e+09 : f32
    "tpu.trace_stop"() : () -> ()
    %47 = vector.shape_cast %11 : vector<1x8xi1> to vector<1x8xi1>
    %48 = vector.broadcast %47 : vector<1x8xi1> to vector<8x8xi1>
    %49 = vector.broadcast %cst_16 : f32 to vector<8x8xf32>
    %50 = arith.select %48, %49, %46 : vector<8x8xi1>, vector<8x8xf32>
    %cst_17 = arith.constant dense<0xFF800000> : vector<8xf32>
    %51 = vector.multi_reduction <maximumf>, %50, %cst_17 [1] : vector<8x8xf32> to vector<8xf32>
    %52 = vector.shape_cast %51 : vector<8xf32> to vector<8x1xf32>
    %53 = vector.broadcast %52 : vector<8x1xf32> to vector<8x8xf32>
    %54 = arith.subf %50, %53 : vector<8x8xf32>
    %55 = math.exp %54 : vector<8x8xf32>
    %cst_18 = arith.constant dense<0.000000e+00> : vector<8xf32>
    %56 = vector.multi_reduction <add>, %55, %cst_18 [1] : vector<8x8xf32> to vector<8xf32>
    %57 = vector.shape_cast %56 : vector<8xf32> to vector<8x1xf32>
    %58 = vector.broadcast %57 : vector<8x1xf32> to vector<8x8xf32>
    %59 = arith.divf %55, %58 : vector<8x8xf32>
    %60 = arith.truncf %59 : vector<8x8xf32> to vector<8x8xbf16>
    %cst_19 = arith.constant dense<0.000000e+00> : vector<8x8xf32>
    %61 = tpu.matmul %60, %45, %cst_19 {dimension_numbers = #tpu.dot_dimension_numbers<[1], [0], [0], [1], [0, 0, 1, 1], [], []>} : vector<8x8xbf16>, vector<8x8xbf16>, vector<8x8xf32> -> vector<8x8xf32>
    %62 = arith.truncf %61 : vector<8x8xf32> to vector<8x8xbf16>
    %63 = vector.extract_strided_slice %3 {offsets = [8, 96], sizes = [8, 32], strides = [1, 1]} : vector<32x128xbf16> to vector<8x32xbf16>
    %cst_20 = arith.constant dense<0.000000e+00> : vector<8x32xf32>
    %64 = tpu.matmul %62, %63, %cst_20 {dimension_numbers = #tpu.dot_dimension_numbers<[1], [0], [0], [1], [0, 0, 1, 1], [], []>} : vector<8x8xbf16>, vector<8x32xbf16>, vector<8x32xf32> -> vector<8x32xf32>
    %65 = arith.addf %39, %64 : vector<8x32xf32>
    %66 = vector.extract_strided_slice %7 {offsets = [0, 16], sizes = [8, 8], strides = [1, 1]} : vector<8x128xf32> to vector<8x8xf32>
    %67 = arith.truncf %66 : vector<8x8xf32> to vector<8x8xbf16>
    %68 = vector.extract_strided_slice %7 {offsets = [0, 48], sizes = [8, 8], strides = [1, 1]} : vector<8x128xf32> to vector<8x8xf32>
    %69 = arith.truncf %68 : vector<8x8xf32> to vector<8x8xbf16>
    %70 = vector.extract_strided_slice %7 {offsets = [0, 80], sizes = [8, 8], strides = [1, 1]} : vector<8x128xf32> to vector<8x8xf32>
    %71 = arith.truncf %70 : vector<8x8xf32> to vector<8x8xbf16>
    "tpu.trace_start"() <{level = 10 : i32, message = "qd,kd->qk"}> : () -> ()
    %cst_21 = arith.constant dense<0.000000e+00> : vector<8x8xf32>
    %72 = tpu.matmul %67, %69, %cst_21 {dimension_numbers = #tpu.dot_dimension_numbers<[1], [1], [0], [0], [0, 0, 1, 0], [], []>} : vector<8x8xbf16>, vector<8x8xbf16>, vector<8x8xf32> -> vector<8x8xf32>
    %cst_22 = arith.constant -1.000000e+09 : f32
    "tpu.trace_stop"() : () -> ()
    %73 = vector.shape_cast %11 : vector<1x8xi1> to vector<1x8xi1>
    %74 = vector.broadcast %73 : vector<1x8xi1> to vector<8x8xi1>
    %75 = vector.broadcast %cst_22 : f32 to vector<8x8xf32>
    %76 = arith.select %74, %75, %72 : vector<8x8xi1>, vector<8x8xf32>
    %cst_23 = arith.constant dense<0xFF800000> : vector<8xf32>
    %77 = vector.multi_reduction <maximumf>, %76, %cst_23 [1] : vector<8x8xf32> to vector<8xf32>
    %78 = vector.shape_cast %77 : vector<8xf32> to vector<8x1xf32>
    %79 = vector.broadcast %78 : vector<8x1xf32> to vector<8x8xf32>
    %80 = arith.subf %76, %79 : vector<8x8xf32>
    %81 = math.exp %80 : vector<8x8xf32>
    %cst_24 = arith.constant dense<0.000000e+00> : vector<8xf32>
    %82 = vector.multi_reduction <add>, %81, %cst_24 [1] : vector<8x8xf32> to vector<8xf32>
    %83 = vector.shape_cast %82 : vector<8xf32> to vector<8x1xf32>
    %84 = vector.broadcast %83 : vector<8x1xf32> to vector<8x8xf32>
    %85 = arith.divf %81, %84 : vector<8x8xf32>
    %86 = arith.truncf %85 : vector<8x8xf32> to vector<8x8xbf16>
    %cst_25 = arith.constant dense<0.000000e+00> : vector<8x8xf32>
    %87 = tpu.matmul %86, %71, %cst_25 {dimension_numbers = #tpu.dot_dimension_numbers<[1], [0], [0], [1], [0, 0, 1, 1], [], []>} : vector<8x8xbf16>, vector<8x8xbf16>, vector<8x8xf32> -> vector<8x8xf32>
    %88 = arith.truncf %87 : vector<8x8xf32> to vector<8x8xbf16>
    %89 = vector.extract_strided_slice %3 {offsets = [16, 96], sizes = [8, 32], strides = [1, 1]} : vector<32x128xbf16> to vector<8x32xbf16>
    %cst_26 = arith.constant dense<0.000000e+00> : vector<8x32xf32>
    %90 = tpu.matmul %88, %89, %cst_26 {dimension_numbers = #tpu.dot_dimension_numbers<[1], [0], [0], [1], [0, 0, 1, 1], [], []>} : vector<8x8xbf16>, vector<8x32xbf16>, vector<8x32xf32> -> vector<8x32xf32>
    %91 = arith.addf %65, %90 : vector<8x32xf32>
    %92 = vector.extract_strided_slice %7 {offsets = [0, 24], sizes = [8, 8], strides = [1, 1]} : vector<8x128xf32> to vector<8x8xf32>
    %93 = arith.truncf %92 : vector<8x8xf32> to vector<8x8xbf16>
    %94 = vector.extract_strided_slice %7 {offsets = [0, 56], sizes = [8, 8], strides = [1, 1]} : vector<8x128xf32> to vector<8x8xf32>
    %95 = arith.truncf %94 : vector<8x8xf32> to vector<8x8xbf16>
    %96 = vector.extract_strided_slice %7 {offsets = [0, 88], sizes = [8, 8], strides = [1, 1]} : vector<8x128xf32> to vector<8x8xf32>
    %97 = arith.truncf %96 : vector<8x8xf32> to vector<8x8xbf16>
    "tpu.trace_start"() <{level = 10 : i32, message = "qd,kd->qk"}> : () -> ()
    %cst_27 = arith.constant dense<0.000000e+00> : vector<8x8xf32>
    %98 = tpu.matmul %93, %95, %cst_27 {dimension_numbers = #tpu.dot_dimension_numbers<[1], [1], [0], [0], [0, 0, 1, 0], [], []>} : vector<8x8xbf16>, vector<8x8xbf16>, vector<8x8xf32> -> vector<8x8xf32>
    %cst_28 = arith.constant -1.000000e+09 : f32
    "tpu.trace_stop"() : () -> ()
    %99 = vector.shape_cast %11 : vector<1x8xi1> to vector<1x8xi1>
    %100 = vector.broadcast %99 : vector<1x8xi1> to vector<8x8xi1>
    %101 = vector.broadcast %cst_28 : f32 to vector<8x8xf32>
    %102 = arith.select %100, %101, %98 : vector<8x8xi1>, vector<8x8xf32>
    %cst_29 = arith.constant dense<0xFF800000> : vector<8xf32>
    %103 = vector.multi_reduction <maximumf>, %102, %cst_29 [1] : vector<8x8xf32> to vector<8xf32>
    %104 = vector.shape_cast %103 : vector<8xf32> to vector<8x1xf32>
    %105 = vector.broadcast %104 : vector<8x1xf32> to vector<8x8xf32>
    %106 = arith.subf %102, %105 : vector<8x8xf32>
    %107 = math.exp %106 : vector<8x8xf32>
    %cst_30 = arith.constant dense<0.000000e+00> : vector<8xf32>
    %108 = vector.multi_reduction <add>, %107, %cst_30 [1] : vector<8x8xf32> to vector<8xf32>
    %109 = vector.shape_cast %108 : vector<8xf32> to vector<8x1xf32>
    %110 = vector.broadcast %109 : vector<8x1xf32> to vector<8x8xf32>
    %111 = arith.divf %107, %110 : vector<8x8xf32>
    %112 = arith.truncf %111 : vector<8x8xf32> to vector<8x8xbf16>
    %cst_31 = arith.constant dense<0.000000e+00> : vector<8x8xf32>
    %113 = tpu.matmul %112, %97, %cst_31 {dimension_numbers = #tpu.dot_dimension_numbers<[1], [0], [0], [1], [0, 0, 1, 1], [], []>} : vector<8x8xbf16>, vector<8x8xbf16>, vector<8x8xf32> -> vector<8x8xf32>
    %114 = arith.truncf %113 : vector<8x8xf32> to vector<8x8xbf16>
    %115 = vector.extract_strided_slice %3 {offsets = [24, 96], sizes = [8, 32], strides = [1, 1]} : vector<32x128xbf16> to vector<8x32xbf16>
    %cst_32 = arith.constant dense<0.000000e+00> : vector<8x32xf32>
    %116 = tpu.matmul %114, %115, %cst_32 {dimension_numbers = #tpu.dot_dimension_numbers<[1], [0], [0], [1], [0, 0, 1, 1], [], []>} : vector<8x8xbf16>, vector<8x32xbf16>, vector<8x32xf32> -> vector<8x32xf32>
    %117 = arith.addf %91, %116 : vector<8x32xf32>
    %118 = vector.shape_cast %117 : vector<8x32xf32> to vector<1x8x32xf32>
    %c0_33 = arith.constant 0 : index
    %c0_34 = arith.constant 0 : index
    %c0_35 = arith.constant 0 : index
    %119 = vector.load %arg5[%c0_33, %c0_34, %c0_35] : memref<1x8x32xf32, #tpu.memory_space<vmem>>, vector<1x8x32xf32>
    tpu.vector_store %arg5[%c0_33, %c0_34, %c0_35], %118 {strides = array<i32>} : memref<1x8x32xf32, #tpu.memory_space<vmem>>, vector<1x8x32xf32>,
    return
  }
  func.func @transform_0(%arg0: i32) -> (i32, i32, i32) {
    %c0_i32 = arith.constant 0 : i32
    %c0_i32_0 = arith.constant 0 : i32
    %c0_i32_1 = arith.constant 0 : i32
    return %arg0, %c0_i32, %c0_i32_0 : i32, i32, i32
  }
  func.func @transform_1(%arg0: i32) -> (i32, i32, i32) {
    %c0_i32 = arith.constant 0 : i32
    %c0_i32_0 = arith.constant 0 : i32
    %c0_i32_1 = arith.constant 0 : i32
    return %arg0, %c0_i32, %c0_i32_0 : i32, i32, i32
  }
  func.func @transform_2(%arg0: i32) -> (i32, i32) {
    %c0_i32 = arith.constant 0 : i32
    %c0_i32_0 = arith.constant 0 : i32
    %c0_i32_1 = arith.constant 0 : i32
    return %c0_i32, %c0_i32_0 : i32, i32
  }
  func.func @transform_3(%arg0: i32) -> (i32, i32) {
    %c0_i32 = arith.constant 0 : i32
    %c0_i32_0 = arith.constant 0 : i32
    %c0_i32_1 = arith.constant 0 : i32
    return %c0_i32, %c0_i32_0 : i32, i32
  }
  func.func @transform_4(%arg0: i32) -> (i32, i32, i32) {
    %c0_i32 = arith.constant 0 : i32
    %c0_i32_0 = arith.constant 0 : i32
    %c0_i32_1 = arith.constant 0 : i32
    return %arg0, %c0_i32, %c0_i32_0 : i32, i32, i32
  }
}

</mosaic_0001>

<bundles_post_ra>
// kernel: tpu_custom_call.1
= control target key start
LH: loop header
LB: loop body
LE: loop exit
PB: predicated region body
PF: predicated region fallthrough
CT: control target
= control target key end

     0   :  { %9 = vsyncpa [#allocation3], 0  ;;  %s1845_s0 = inlined_call_operand.hbm [shape: f32[2,8,32], index: 0, kind: input, shape index: {}]   ;;  %s1846_s1 = inlined_call_operand.vmem [shape: s32[2,1,8], index: 1, kind: input, shape index: {}]   ;;  %s1847_s2 = inlined_call_operand.hbm [shape: bf16[32,128], index: 2, kind: input, shape index: {}]   ;;  %s1848_s3 = inlined_call_operand.vmem [shape: f32[1,128], index: 3, kind: input, shape index: {}]   ;;  %s1849_s4 = inlined_call_operand.hbm [shape: f32[2,8,32], index: 4, kind: output, shape index: {}]  }
   0x1   :  { %11 = vsyncpa [#allocation3 + $0x1], 0 }
   0x2   :  { %12 = vsyncpa [#allocation6], 0 }
   0x3   :  { %13 = vsyncpa [#allocation4], 0 }
   0x4   :  { %15 = vsyncpa [#allocation4 + $0x1], 0  ;;  %s1506_s15 = smov 0   ;;  %s1508_s16 = smov 0  }
   0x5   :  { %s1510_s17 = smov 0   ;;  %s1512_s18 = smov 0  }
   0x6 LB: > { %s1527_s19 = sadd.s32 4294967295, %s1459_s18   ;;  %s1094_s20 = sadd.s32 4294967294, %s1459_s18   ;;  %s1459_s18 = sphi %s1512_s18, %s1869_s18   ;;  %s1455_s17 = sphi %s1510_s17, %s1868_s17   ;;  %s1451_s16 = sphi %s1508_s16, %s1867_s16   ;;  %s1447_s15 = sphi %s1506_s15, %s1866_s15  }
   0x7   : > { %p41_p0 = scmp.ne.s32.totalorder %s1451_s16, %s1447_s15  ;;  %p1850_p1 = scmp.eq.s32.totalorder %s1527_s19, 0 }
   0x8   : > { %p139_p3 = scmp.eq.s32.totalorder %s1094_s20, 1  ;;  %p1095_p5 = scmp.ge.s32.totalorder %s1459_s18, 1 }
   0x9   : > { %p1536_p4 = por %p1850_p1, %p41_p0  ;;  %p146_p7 = scmp.lt.s32.totalorder %s1459_s18, 3 }
   0xa   : > { %p1541_p6 = por %p139_p3, %p41_p0  ;;  %s1461_s24 = smov [#allocation5]  }
   0xb   : > { %s1853_s21 = scalar_select %p1536_p4, 1, 0 }
   0xc   : > { %s1854_s22 = scalar_select %p1541_p6, 1, 0 }
   0xd   : > { %p1546_p8 = pnand %p1095_p5, %p146_p7  ;;  %s158_s25 = sshll.u32 %s1461_s24, 4  ;;  %s1550_s25 = int_to_ptr.vmem [resolvable:$true] %s158_s25 }
   0xe   : > { %s1562_s27 = sadd.s32 1, %s1459_s18   ;;  %s28_s28 = sadd.s32 1, %s1455_s17 }
   0xf   : > { %s1855_s23 = scalar_select %p1546_p8, 1, 0 }
  0x10   : > { %p1243_p9 = pneg %p1546_p8  ;;  %s25_s29 = ssub.s32 %s1459_s18, %s1562_s27 }
  0x11   : > { %s1331_s6 = scalar_lea.hbm %s1847_s2, 256 }
  0x12   : > { %p1557_p11 = pnand %p1243_p9, %p1850_p1  ;;  %p1332_p12 = scmp.ne.s32.totalorder %s1847_s2, %s1331_s6 }
  0x13   : > { %p1338_p5 = scmp.lt.u32.totalorder %s1331_s6, %s1847_s2 }
  0x14   : > { %p1333_p13 = pneg %p1557_p11 }
  0x16   : > { %p1334_p0 = pnand %p1333_p13, %p1332_p12 }
  0x18   : > { %p1335_p3 = pneg %p1334_p0 }
  0x1a   : > { %p1340_p7 = pnand %p1338_p5, %p1335_p3 }
  0x1c   : > { %1343 = shalt.err (!%p1340_p7)
}
  0x1d   : > { %s1344_s11 = scalar_lea.vmem %s1550_s25, 256  ;;  %p1352_p2 = scmp.lt.s32.totalorder %s1550_s25, %s1550_s25 }
  0x1e   : > { %p1345_p9 = scmp.ne.s32.totalorder %s1550_s25, %s1344_s11  ;;  %p1353_p6 = scmp.lt.s32.totalorder %s1344_s11, %s1344_s11 }
  0x20   : > { %p1347_p10 = pnand %p1345_p9, %p1333_p13  ;;  %p1354_p4 = por %p1353_p6, %p1352_p2 }
  0x22   : > { %p1348_p1 = pneg %p1347_p10 }
  0x24   : > { %p1355_p8 = pnand %p1354_p4, %p1348_p1 }
  0x26   : > { %1358 = shalt.err (!%p1355_p8)
}
  0x27   : > { %s1462_s12 = smov 64   ;;  %s1463_s13 = smov 4  }
  0x28   : > { %1246 = dma.hbm_to_vmem [thread:$0]  (!%p1557_p11), %s1847_s2, 256, %s1550_s25, [#allocation6], %s1462_s12, %s1462_s12, %s1463_s13  }
  0x29   : > { %p26_p2 = scmp.eq.s32.totalorder %s25_s29, 0  ;;  %p35_p1 = scmp.ne.s32.totalorder %s1455_s17, %s1451_s16 }
  0x2a   : > { %p36_p4 = scmp.eq.s32.totalorder %s1459_s18, 0  ;;  %p1256_p6 = scmp.lt.s32.totalorder %s1459_s18, 2 }
  0x2b   : > { %s1593_s24 = scalar_select %p26_p2, %s1455_s17, %s28_s28  }
  0x2c   : > { %p37_p8 = por %p36_p4, %p35_p1  ;;  %p1857_p10 = scmp.eq.s32.totalorder %s1527_s19, 1 }
  0x2d   : > { %s175_s5 = sand.u32 1, %s1455_s17   ;;  %s1099_s6 = sshll.u32 %s1459_s18, 7 }
  0x2e   : > { %p1597_p12 = por %p1857_p10, %p35_p1  ;;  %s1098_s7 = sshll.u32 %s175_s5, 3 }
  0x2f   : > { %s1606_s9 = scalar_lea.hbm %s1845_s0, %s1099_s6  ;;  %s179_s25 = scalar_lea.vmem [#allocation2], %s1098_s7 }
  0x30   : > { %s186_s28 = sshll.u32 %s179_s25, 4  ;;  %p1608_p11 = pnand %p1256_p6, %p37_p8  ;;  %s1612_s28 = int_to_ptr.vmem [resolvable:$true] %s186_s28 }
  0x31   : > { %s176_s10 = scalar_lea.sflag [#allocation3], %s175_s5  ;;  %s1359_s11 = scalar_lea.hbm %s1606_s9, 128 }
  0x32   : > { %p1360_p13 = scmp.ne.s32.totalorder %s1606_s9, %s1359_s11  ;;  %p1361_p0 = pneg %p1608_p11 }
  0x33   : > { %s1364_s14 = scalar_lea.hbm %s1845_s0, 256  ;;  %p1365_p7 = scmp.lt.u32.totalorder %s1606_s9, %s1845_s0 }
  0x34   : > { %p1362_p3 = pnand %p1361_p0, %p1360_p13  ;;  %p1366_p9 = scmp.lt.u32.totalorder %s1364_s14, %s1359_s11 }
  0x35   : > { %p1368_p1 = scmp.lt.u32.totalorder %s1359_s11, %s1606_s9 }
  0x36   : > { %p1363_p5 = pneg %p1362_p3  ;;  %p1367_p2 = por %p1366_p9, %p1365_p7 }
  0x38   : > { %p1369_p4 = por %p1368_p1, %p1367_p2 }
  0x3a   : > { %p1370_p6 = pnand %p1369_p4, %p1363_p5 }
  0x3c   : > { %1373 = shalt.err (!%p1370_p6)
}
  0x3d   : > { %s1374_s5 = scalar_lea.vmem %s1612_s28, 128  ;;  %s1464_s7 = smov [#allocation2]  }
  0x3e   : > { %p1375_p8 = scmp.ne.s32.totalorder %s1612_s28, %s1374_s5  ;;  %s1379_s26 = sshll.u32 %s1464_s7, 4  ;;  %s1380_s26 = int_to_ptr.vmem [resolvable:$false] %s1379_s26 }
  0x3f   : > { %s1381_s8 = scalar_lea.vmem %s1380_s26, 256  ;;  %p1382_p3 = scmp.lt.s32.totalorder %s1612_s28, %s1380_s26 }
  0x40   : > { %p1377_p10 = pnand %p1375_p8, %p1361_p0  ;;  %p1383_p7 = scmp.lt.s32.totalorder %s1381_s8, %s1374_s5 }
  0x42   : > { %p1378_p13 = pneg %p1377_p10  ;;  %p1384_p9 = por %p1383_p7, %p1382_p3 }
  0x44   : > { %p1385_p2 = pnand %p1384_p9, %p1378_p13 }
  0x46   : > { %1388 = shalt.err (!%p1385_p2)
}
  0x47   : > { %1250 = dma.hbm_to_vmem [thread:$0]  (!%p1608_p11), %s1606_s9, 128, %s1612_s28, %s176_s10  }
  0x48   : > { %p1860_p5 = scmp.ne.s32.totalorder %s1855_s23, 0 }
  0x49   : > { %s1642_s25 = sand.u32 (!%p1860_p5), 1, %s1451_s16   ;;  %p1861_p0 = scmp.ne.s32.totalorder (!%p1860_p5), %s1853_s21, 0 }
  0x4a   : > { %201 = sbr.rel (%p1860_p5) target bundleno = 3246 (0xcae), region = 36  ;;  %s1101_s11 = sshll.u32 (!%p1860_p5), %s1642_s25, 3 }
  0x4b   : > { %s204_s12 = scalar_lea.sflag (!%p1860_p5), [#allocation3], %s1642_s25  ;;  %s207_s13 = scalar_lea.vmem (!%p1860_p5), [#allocation2], %s1101_s11 }
  0x51   : > { %1434 = dma.done.wait (%p1861_p0), %s204_s12, 128  }
  0x52   : > { %1436 = vsyncadd (%p1861_p0), %s204_s12, 4294967168  ;;  %p1862_p11 = scmp.eq.s32.totalorder %s1527_s19, 0 }
  0x54   : > { %1438 = dma.done.wait (%p1862_p11), [#allocation6], 256   ;;  %p1863_p1 = pmov %p1862_p11 }
  0x55   : > { %v1465_v0 = vmov 0.0   ;;  %vm1466_vm0 = vmmov 0   ;;  %v245_v1 = vld [vmem:[#allocation5] sm:$0xf]  ;;  %v1662_v2 = vld [vmem:[#allocation5 + $0x4] sm:$0xf]  ;;  %v366_v20 = vlaneseq }
  0x56   : > { %1440 = vsyncadd (%p1863_p1), [#allocation6], 4294967040  ;;  %1155 = vmatprep.subr.bf16.mxu0 %v1465_v0  ;;  %1159 = vmatprep.mubr.msk.bf16.mxu0 %vm1466_vm0, %v1465_v0  ;;  %v1664_v3 = vld [vmem:[#allocation5 + $0x8] sm:$0xf]  ;;  %v1105_v4 = vcombine.low %v245_v1, %v1662_v2  ;;  %v1667_v5 = vld [vmem:[#allocation5 + $0xc] sm:$0xf]  ;;  %v1110_v33 = vcombine.low %v245_v1, %v245_v1 }
  0x57   : > { %1163 = vmatprep.subr.bf16.mxu1 %v1465_v0  ;;  %1165 = vmatprep.mubr.msk.bf16.mxu1 %vm1466_vm0, %v1465_v0  ;;  %v1106_v6 = vcombine.low %v1664_v3, %v1667_v5  ;;  %v243_v7 = vld [vmem:[%s207_s13] sm:$0xff]  ;;  %vm268_vm1 = vcmask 261120   ;;  %s1467_s9 = smov 64   ;;  %s1468_s28 = smov 96   ;;  %vm389_vm2 = vcmask 1043456   ;;  %vm318_vm3 = vcmask 64512  }
  0x58   : > { %1156 = vmatpush3.bf16.msra.mxu0 %v1105_v4  ;;  %v244_v8 = vpack.c.bf16 %v243_v7, %v243_v7  ;;  %v1679_v9 = vld [vmem:[%s1848_s3] ss:$0 sm:$0xff]  ;;  %p239_p4 = scmp.lt.s32.totalorder %s1527_s19, 1  ;;  %v367_v22 = vshrl.u32 %v366_v20, 7  ;;  %v1469_v24 = vmov 0   ;;  %s1470_s6 = smov 32  }
  0x59   : > { %1157 = vmatprep.subr.bf16.mxu0 %v1465_v0  ;;  %s1471_s5 = smov 56   ;;  %s1472_s7 = smov 88  }
  0x5a   : > { %s240_s29 = scalar_select %p239_p4, %s1527_s19, 1  ;;  %v368_v23 = vsub.s32 0, %v367_v22 }
  0x5b   : > { %s1473_s26 = smov 120   ;;  %s1474_s8 = smov 112  }
  0x5c   : > { %1158 = vmatpush3.bf16.msra.mxu0 %v1106_v6  ;;  %s241_s20 = scalar_lea.vmem %s1846_s1, %s240_s29  ;;  %s1475_s12 = smov 80  }
  0x5d   : > { %1169 = vmatprep.subr.bf16.mxu0 %v1465_v0  ;;  %v312_v21 = vld [vmem:[%s241_s20] sm:$0x1]  ;;  %s1476_s13 = smov 72   ;;  %s1477_s21 = smov 104  }
  0x5e   : > { %vm313_vm4 = vcmp.eq.s32.totalorder %v312_v21, 0  ;;  %s1478_s23 = smov 48   ;;  %s1125_s29 = sshll.u32 %s1527_s19, 7 }
  0x5f   : > { %1160 = vmatmul.mubr.msk.bf16.vlgmr.msra.gmra.mrb[0].mxu0 %vm268_vm1, %v244_v8  ;;  %v365_v25 = vsel %vm313_vm4, 1, %v1469_v24  ;;  %s238_s10 = scalar_lea.vmem [#allocation7], %s1101_s11  ;;  %s1480_s19 = smov [#allocation7]  }
  0x60   : > { %1171 = vmatprep.mubr.msk.bf16.mxu0 %vm1466_vm0, %v1465_v0  ;;  %v1700_v26 = vrot.slane %v365_v25, %v368_v23  ;;  %s1393_s11 = sshll.u32 %s1480_s19, 4  ;;  %s1394_s11 = int_to_ptr.vmem [resolvable:$false] %s1393_s11 }
  0x62   : > { %vm370_vm5 = vcmp.eq.s32.totalorder %v1700_v26, 1 }
 0x132   : > { %v306_v10 = vpop.f32.mrb[0].mxu0 }
 0x133   : > { %v307_v11 = vadd.f32 %v1679_v9, %v306_v10  ;;  %v1161_v12 = vpop.f32.mrb[1].mxu0 }
 0x134   : > { %v309_v13 = vpop.f32.mrb[2].mxu0 }
 0x135   : > { %v1682_v14 = vpack.c.bf16 %v307_v11, %v307_v11  ;;  %v1162_v15 = vpop.f32.mrb[3].mxu0 }
 0x137   : > { %384 = vrot.lane.b32.xlu1 %v1682_v14, %s1467_s9  ;;  %316 = vrot.lane.b32.xlu0 %v1682_v14, %s1468_s28  ;;  %s1479_s9 = smov 40  }
 0x1a9   : > { %v385_v16 = vpop.permute.xlu1 %384  ;;  %v317_v17 = vpop.permute.xlu0 %316 }
 0x1aa   : > { %v391_v18 = vsel %vm389_vm2, %v385_v16, 0  ;;  %v323_v19 = vsel %vm318_vm3, %v317_v17, 0 }
 0x1ab   : > { %1164 = vmatpush3.bf16.xpose.msra.mxu1 %v323_v19  ;;  %1170 = vmatpush3.bf16.msra.mxu0 %v391_v18 }
 0x1ac   : > { %1181 = vmatprep.subr.bf16.mxu0 %v1465_v0  ;;  %1175 = vmatprep.subr.bf16.mxu1 %v1465_v0 }
 0x1b2   : > { %1166 = vmatmul.mubr.msk.bf16.vlgmr.msra.gmra.mrb[0].mxu1 %vm318_vm3, %v1682_v14 }
 0x1b3   : > { %1177 = vmatprep.mubr.msk.bf16.mxu1 %vm1466_vm0, %v1465_v0 }
 0x285   : > { %v359_v27 = vpop.f32.mrb[0].mxu1 }
 0x286   : > { %v371_v28 = vsel %vm370_vm5, -1e+09, %v359_v27  ;;  %v1167_v29 = vpop.f32.mrb[1].mxu1 }
 0x287   : > { %v362_v30 = vpop.f32.mrb[2].mxu1  ;;  %v372_v31 = vsel %vm318_vm3, %v371_v28, -inf }
 0x288   : > { %373 = vmax.xlane.f32.xlu0 %v372_v31  ;;  %v1168_v32 = vpop.f32.mrb[3].mxu1  ;;  %v1114_v30 = vcombine.low %v1662_v2, %v1662_v2 }
 0x29e   : > { %435 = vrot.lane.b32.xlu0 %v1110_v33, %s1470_s6 }
 0x2a2   : > { %551 = vrot.lane.b32.xlu0 %v1682_v14, %s1471_s5  ;;  %s1800_s5 = scalar_lea.hbm %s1849_s4, %s1125_s29 }
 0x315   : > { %v374_v34 = vpop.xlane.xlu0 %373 }
 0x316   : > { %v375_v35 = vsub.f32 %v371_v28, %v374_v34 }
 0x318   : > { %v376_v36 = vmul.f32 1.442695, %v375_v35 }
 0x319   : > { %v436_v37 = vpop.permute.xlu0 %435 }
 0x31a   : > { %1315 = vpow2.f32 %v376_v36  ;;  %v441_v38 = vsel %vm389_vm2, %v436_v37, 0 }
 0x31b   : > { %1176 = vmatpush3.bf16.msra.mxu1 %v441_v38 }
 0x31c   : > { %1187 = vmatprep.subr.bf16.mxu1 %v1465_v0 }
 0x31d   : > { %v552_v48 = vpop.permute.xlu0 %551 }
 0x31e   : > { %v557_v53 = vsel %vm389_vm2, %v552_v48, 0 }
 0x324   : > { %v1316_v39 = vpop.eup %1315 }
 0x325   : > { %v378_v40 = vsel %vm318_vm3, %v1316_v39, 0.0 }
 0x326   : > { %379 = vadd.xlane.f32.xlu1 %v378_v40 }
 0x337   : > { %490 = vrot.lane.b32.xlu1 %v1682_v14, %s1472_s7  ;;  %s992_s7 = scalar_lea.sflag [#allocation4], %s1642_s25 }
 0x33b   : > { %488 = vrot.lane.b32.xlu1 %v1682_v14, %s1473_s26 }
 0x3b3   : > { %v380_v41 = vpop.xlane.xlu1 %379 }
 0x3b4   : > { %1317 = vrcp.f32 %v380_v41 }
 0x3b7   : > { %v491_v44 = vpop.permute.xlu1 %490 }
 0x3b8   : > { %v496_v46 = vsel %vm318_vm3, %v491_v44, 0 }
 0x3bb   : > { %v489_v47 = vpop.permute.xlu1 %488 }
 0x3be   : > { %v1318_v42 = vpop.eup %1317 }
 0x3bf   : > { %v382_v43 = vmul.f32 %v1318_v42, %v1316_v39 }
 0x3c1   : > { %v383_v45 = vpack.c.bf16 %v382_v43, %v382_v43 }
 0x3c3   : > { %1172 = vmatmul.mubr.msk.bf16.vlgmr.msra.gmra.mrb[4].mxu0 %vm318_vm3, %v383_v45 }
 0x3c4   : > { %1182 = vmatpush3.bf16.xpose.msra.mxu0 %v496_v46  ;;  %1183 = vmatprep.mubr.msk.bf16.mxu0 %vm1466_vm0, %v1465_v0 }
 0x3c5   : > { %1193 = vmatprep.subr.bf16.mxu0 %v1465_v0 }
 0x3cb   : > { %1184 = vmatmul.mubr.msk.bf16.vlgmr.msra.gmra.mrb[8].mxu0 %vm318_vm3, %v489_v47 }
 0x3cc   : > { %1195 = vmatprep.mubr.msk.bf16.mxu0 %vm1466_vm0, %v1465_v0 }
 0x496   : > { %v427_v49 = vpop.f32.mrb[4].mxu0 }
 0x497   : > { %v433_v50 = vpack.c.bf16 %v427_v49, %v427_v49  ;;  %v1173_v51 = vpop.f32.mrb[5].mxu0 }
 0x498   : > { %v430_v52 = vpop.f32.mrb[6].mxu0 }
 0x499   : > { %v1174_v54 = vpop.f32.mrb[7].mxu0  ;;  %1178 = vmatmul.mubr.msk.bf16.vlgmr.msra.gmra.mrb[4].mxu1 %vm318_vm3, %v433_v50 }
 0x49a   : > { %1188 = vmatpush3.bf16.msra.mxu1 %v557_v53  ;;  %1189 = vmatprep.mubr.msk.bf16.mxu1 %vm1466_vm0, %v1465_v0 }
 0x49b   : > { %1199 = vmatprep.subr.bf16.mxu1 %v1465_v0 }
 0x49e   : > { %v532_v55 = vpop.f32.mrb[8].mxu0 }
 0x49f   : > { %v538_v56 = vsel %vm370_vm5, -1e+09, %v532_v55  ;;  %v1185_v57 = vpop.f32.mrb[9].mxu0 }
 0x4a0   : > { %v535_v58 = vpop.f32.mrb[10].mxu0  ;;  %v539_v59 = vsel %vm318_vm3, %v538_v56, -inf }
 0x4a1   : > { %540 = vmax.xlane.f32.xlu1 %v539_v59  ;;  %v1186_v60 = vpop.f32.mrb[11].mxu0 }
 0x4b2   : > { %654 = vrot.lane.b32.xlu1 %v1682_v14, %s1474_s8 }
 0x52e   : > { %v541_v61 = vpop.xlane.xlu1 %540 }
 0x52f   : > { %v542_v62 = vsub.f32 %v538_v56, %v541_v61  ;;  %v1118_v61 = vcombine.low %v1664_v3, %v1664_v3 }
 0x531   : > { %v543_v63 = vmul.f32 1.442695, %v542_v62  ;;  %v1122_v62 = vcombine.low %v1667_v5, %v1667_v5 }
 0x532   : > { %v655_v18 = vpop.permute.xlu1 %654 }
 0x533   : > { %1319 = vpow2.f32 %v543_v63 }
 0x53d   : > { %v1320_v1 = vpop.eup %1319 }
 0x53e   : > { %v545_v4 = vsel %vm318_vm3, %v1320_v1, 0.0 }
 0x53f   : > { %546 = vadd.xlane.f32.xlu0 %v545_v4 }
 0x555   : > { %656 = vrot.lane.b32.xlu0 %v1682_v14, %s1475_s12 }
 0x56c   : > { %v1732_v6 = vpop.f32.mrb[4].mxu1 }
 0x56d   : > { %v1179_v7 = vpop.f32.mrb[5].mxu1 }
 0x56e   : > { %v480_v8 = vpop.f32.mrb[6].mxu1 }
 0x56f   : > { %v1180_v10 = vpop.f32.mrb[7].mxu1 }
 0x5cc   : > { %v547_v11 = vpop.xlane.xlu0 %546 }
 0x5cd   : > { %1321 = vrcp.f32 %v547_v11 }
 0x5d0   : > { %v657_v15 = vpop.permute.xlu0 %656 }
 0x5d1   : > { %v662_v17 = vsel %vm318_vm3, %v657_v15, 0 }
 0x5d7   : > { %v1322_v12 = vpop.eup %1321 }
 0x5d8   : > { %v549_v13 = vmul.f32 %v1322_v12, %v1320_v1 }
 0x5da   : > { %v550_v16 = vpack.c.bf16 %v549_v13, %v549_v13 }
 0x5dc   : > { %1190 = vmatmul.mubr.msk.bf16.vlgmr.msra.gmra.mrb[8].mxu1 %vm318_vm3, %v550_v16 }
 0x5dd   : > { %1200 = vmatpush3.bf16.xpose.msra.mxu1 %v662_v17  ;;  %1201 = vmatprep.mubr.msk.bf16.mxu1 %vm1466_vm0, %v1465_v0 }
 0x5de   : > { %1211 = vmatprep.subr.bf16.mxu1 %v1465_v0 }
 0x5e4   : > { %1202 = vmatmul.mubr.msk.bf16.vlgmr.msra.gmra.mrb[12].mxu1 %vm318_vm3, %v655_v18 }
 0x5e5   : > { %1213 = vmatprep.mubr.msk.bf16.mxu1 %vm1466_vm0, %v1465_v0 }
 0x6af   : > { %v593_v19 = vpop.f32.mrb[8].mxu1 }
 0x6b0   : > { %v1191_v20 = vpop.f32.mrb[9].mxu1  ;;  %v599_v36 = vpack.c.bf16 %v593_v19, %v593_v19 }
 0x6b1   : > { %v596_v21 = vpop.f32.mrb[10].mxu1 }
 0x6b2   : > { %v1192_v22 = vpop.f32.mrb[11].mxu1 }
 0x6b7   : > { %v698_v23 = vpop.f32.mrb[12].mxu1 }
 0x6b8   : > { %v704_v24 = vsel %vm370_vm5, -1e+09, %v698_v23  ;;  %v1203_v25 = vpop.f32.mrb[13].mxu1 }
 0x6b9   : > { %v701_v27 = vpop.f32.mrb[14].mxu1  ;;  %v705_v28 = vsel %vm318_vm3, %v704_v24, -inf }
 0x6ba   : > { %706 = vmax.xlane.f32.xlu0 %v705_v28  ;;  %v1204_v29 = vpop.f32.mrb[15].mxu1 }
 0x6d0   : > { %601 = vrot.lane.b32.xlu0 %v1114_v30, %s1470_s6 }
 0x6d4   : > { %822 = vrot.lane.b32.xlu0 %v1682_v14, %s1476_s13 }
 0x6d8   : > { %820 = vrot.lane.b32.xlu0 %v1682_v14, %s1477_s21 }
 0x747   : > { %v707_v31 = vpop.xlane.xlu0 %706 }
 0x748   : > { %v708_v32 = vsub.f32 %v704_v24, %v707_v31 }
 0x74a   : > { %v709_v33 = vmul.f32 1.442695, %v708_v32 }
 0x74b   : > { %v602_v34 = vpop.permute.xlu0 %601 }
 0x74c   : > { %1323 = vpow2.f32 %v709_v33  ;;  %v607_v35 = vsel %vm389_vm2, %v602_v34, 0 }
 0x74d   : > { %1194 = vmatpush3.bf16.msra.mxu0 %v607_v35 }
 0x74e   : > { %1205 = vmatprep.subr.bf16.mxu0 %v1465_v0 }
 0x74f   : > { %v823_v43 = vpop.permute.xlu0 %822 }
 0x750   : > { %1196 = vmatmul.mubr.msk.bf16.vlgmr.msra.gmra.mrb[12].mxu0 %vm318_vm3, %v599_v36  ;;  %v828_v45 = vsel %vm318_vm3, %v823_v43, 0 }
 0x751   : > { %1207 = vmatprep.mubr.msk.bf16.mxu0 %vm1466_vm0, %v1465_v0 }
 0x753   : > { %v821_v46 = vpop.permute.xlu0 %820 }
 0x756   : > { %v1324_v2 = vpop.eup %1323 }
 0x757   : > { %v711_v37 = vsel %vm318_vm3, %v1324_v2, 0.0 }
 0x758   : > { %712 = vadd.xlane.f32.xlu1 %v711_v37 }
 0x769   : > { %717 = vrot.lane.b32.xlu1 %v1682_v14, %s1478_s23 }
 0x7e5   : > { %v713_v38 = vpop.xlane.xlu1 %712 }
 0x7e6   : > { %1325 = vrcp.f32 %v713_v38 }
 0x7e9   : > { %v718_v39 = vpop.permute.xlu1 %717 }
 0x7ea   : > { %v723_v40 = vsel %vm389_vm2, %v718_v39, 0 }
 0x7eb   : > { %1206 = vmatpush3.bf16.msra.mxu0 %v723_v40 }
 0x7ec   : > { %1217 = vmatprep.subr.bf16.mxu0 %v1465_v0 }
 0x7f0   : > { %v1326_v41 = vpop.eup %1325 }
 0x7f1   : > { %v715_v42 = vmul.f32 %v1326_v41, %v1324_v2 }
 0x7f3   : > { %v716_v44 = vpack.c.bf16 %v715_v42, %v715_v42 }
 0x7f5   : > { %1208 = vmatmul.mubr.msk.bf16.vlgmr.msra.gmra.mrb[16].mxu0 %vm318_vm3, %v716_v44 }
 0x7f6   : > { %1218 = vmatpush3.bf16.xpose.msra.mxu0 %v828_v45  ;;  %1219 = vmatprep.mubr.msk.bf16.mxu0 %vm1466_vm0, %v1465_v0 }
 0x7f7   : > { %1229 = vmatprep.subr.bf16.mxu0 %v1465_v0 }
 0x7fd   : > { %1220 = vmatmul.mubr.msk.bf16.vlgmr.msra.gmra.mrb[20].mxu0 %vm318_vm3, %v821_v46 }
 0x7fe   : > { %1231 = vmatprep.mubr.msk.bf16.mxu0 %vm1466_vm0, %v1465_v0 }
 0x823   : > { %v643_v47 = vpop.f32.mrb[12].mxu0 }
 0x824   : > { %v1197_v48 = vpop.f32.mrb[13].mxu0 }
 0x825   : > { %v646_v49 = vpop.f32.mrb[14].mxu0 }
 0x826   : > { %v1198_v50 = vpop.f32.mrb[15].mxu0 }
 0x8c8   : > { %v759_v51 = vpop.f32.mrb[16].mxu0 }
 0x8c9   : > { %v1209_v52 = vpop.f32.mrb[17].mxu0  ;;  %v765_v8 = vpack.c.bf16 %v759_v51, %v759_v51 }
 0x8ca   : > { %v762_v53 = vpop.f32.mrb[18].mxu0 }
 0x8cb   : > { %v1210_v54 = vpop.f32.mrb[19].mxu0 }
 0x8d0   : > { %v864_v55 = vpop.f32.mrb[20].mxu0 }
 0x8d1   : > { %v870_v56 = vsel %vm370_vm5, -1e+09, %v864_v55  ;;  %v1221_v57 = vpop.f32.mrb[21].mxu0 }
 0x8d2   : > { %v867_v58 = vpop.f32.mrb[22].mxu0  ;;  %v871_v59 = vsel %vm318_vm3, %v870_v56, -inf }
 0x8d3   : > { %872 = vmax.xlane.f32.xlu0 %v871_v59  ;;  %v1222_v60 = vpop.f32.mrb[23].mxu0 }
 0x8e9   : > { %767 = vrot.lane.b32.xlu0 %v1118_v61, %s1470_s6 }
 0x8ed   : > { %933 = vrot.lane.b32.xlu0 %v1122_v62, %s1470_s6 }
 0x8f1   : > { %484 = vrot.lane.b32.xlu0 %v1732_v6, %s1468_s28 }
 0x960   : > { %v873_v26 = vpop.xlane.xlu0 %872 }
 0x961   : > { %v874_v63 = vsub.f32 %v870_v56, %v873_v26 }
 0x963   : > { %v875_v1 = vmul.f32 1.442695, %v874_v63 }
 0x964   : > { %v768_v4 = vpop.permute.xlu0 %767 }
 0x965   : > { %1327 = vpow2.f32 %v875_v1  ;;  %v773_v7 = vsel %vm389_vm2, %v768_v4, 0 }
 0x966   : > { %1212 = vmatpush3.bf16.msra.mxu1 %v773_v7 }
 0x967   : > { %1223 = vmatprep.subr.bf16.mxu1 %v1465_v0 }
 0x968   : > { %v934_v3 = vpop.permute.xlu0 %933 }
 0x969   : > { %v939_v10 = vsel %vm389_vm2, %v934_v3, 0  ;;  %1214 = vmatmul.mubr.msk.bf16.vlgmr.msra.gmra.mrb[16].mxu1 %vm318_vm3, %v765_v8 }
 0x96a   : > { %1225 = vmatprep.mubr.msk.bf16.mxu1 %vm1466_vm0, %v1465_v0  ;;  %1230 = vmatpush3.bf16.msra.mxu0 %v939_v10 }
 0x96c   : > { %v485_v30 = vpop.permute.xlu0 %484 }
 0x96d   : > { %v487_v32 = vadd.f32 %v1679_v9, %v485_v30 }
 0x96f   : > { %v1328_v5 = vpop.eup %1327 }
 0x970   : > { %v877_v6 = vsel %vm318_vm3, %v1328_v5, 0.0 }
 0x971   : > { %878 = vadd.xlane.f32.xlu1 %v877_v6 }
 0x982   : > { %883 = vrot.lane.b32.xlu1 %v1682_v14, %s1479_s9 }
 0x986   : > { %650 = vrot.lane.b32.xlu1 %v643_v47, %s1468_s28 }
 0x9fe   : > { %v879_v11 = vpop.xlane.xlu1 %878 }
 0x9ff   : > { %1329 = vrcp.f32 %v879_v11 }
 0xa02   : > { %v884_v12 = vpop.permute.xlu1 %883 }
 0xa03   : > { %v889_v13 = vsel %vm389_vm2, %v884_v12, 0 }
 0xa04   : > { %1224 = vmatpush3.bf16.msra.mxu1 %v889_v13 }
 0xa06   : > { %v651_v31 = vpop.permute.xlu1 %650 }
 0xa07   : > { %v653_v34 = vadd.f32 %v651_v31, %v487_v32 }
 0xa09   : > { %v1330_v15 = vpop.eup %1329 }
 0xa0a   : > { %v881_v16 = vmul.f32 %v1330_v15, %v1328_v5 }
 0xa0c   : > { %v882_v17 = vpack.c.bf16 %v881_v16, %v881_v16 }
 0xa0e   : > { %1226 = vmatmul.mubr.msk.bf16.vlgmr.msra.gmra.mrb[20].mxu1 %vm318_vm3, %v882_v17 }
 0xa3c   : > { %v809_v0 = vpop.f32.mrb[16].mxu1 }
 0xa3d   : > { %816 = vrot.lane.b32.xlu0 %v809_v0, %s1468_s28  ;;  %v1215_v18 = vpop.f32.mrb[17].mxu1 }
 0xa3e   : > { %v812_v19 = vpop.f32.mrb[18].mxu1 }
 0xa3f   : > { %v1216_v20 = vpop.f32.mrb[19].mxu1 }
 0xaaf   : > { %v817_v33 = vpop.permute.xlu0 %816 }
 0xab0   : > { %v819_v35 = vadd.f32 %v817_v33, %v653_v34 }
 0xae1   : > { %v925_v14 = vpop.f32.mrb[20].mxu1 }
 0xae2   : > { %v931_v21 = vpack.c.bf16 %v925_v14, %v925_v14  ;;  %v1227_v22 = vpop.f32.mrb[21].mxu1 }
 0xae3   : > { %v928_v23 = vpop.f32.mrb[22].mxu1 }
 0xae4   : > { %v1228_v24 = vpop.f32.mrb[23].mxu1  ;;  %1232 = vmatmul.mubr.msk.bf16.vlgmr.msra.gmra.mrb[24].mxu0 %vm318_vm3, %v931_v21 }
 0xbb7   : > { %v975_v25 = vpop.f32.mrb[24].mxu0 }
 0xbb8   : > { %982 = vrot.lane.b32.xlu1 %v975_v25, %s1468_s28  ;;  %v1233_v27 = vpop.f32.mrb[25].mxu0  ;;  %s1005_s28 = sshll.u32 %s238_s10, 4  ;;  %s1802_s28 = int_to_ptr.vmem [resolvable:$true] %s1005_s28 }
 0xbb9   : > { %v978_v28 = vpop.f32.mrb[26].mxu0  ;;  %s1389_s26 = scalar_lea.vmem %s1802_s28, 128  ;;  %p1396_p13 = scmp.lt.s32.totalorder %s1802_s28, %s1394_s11 }
 0xbba   : > { %v1234_v29 = vpop.f32.mrb[27].mxu0  ;;  %p1390_p6 = scmp.ne.s32.totalorder %s1802_s28, %s1389_s26 }
 0xbbc   : > { %p1391_p8 = pnand %p1390_p6, %p1597_p12 }
 0xbbe   : > { %p1392_p10 = pneg %p1391_p8 }
 0xc2a   : > { %v983_v36 = vpop.permute.xlu1 %982 }
 0xc2b   : > { %v985_v2 = vadd.f32 %v983_v36, %v819_v35 }
 0xc2d   : > { %987 = vrot.lane.b32.xlu0 %v985_v2, %s1470_s6  ;;  %s1395_s6 = scalar_lea.vmem %s1394_s11, 256 }
 0xc2e   : > { %p1397_p3 = scmp.lt.s32.totalorder %s1395_s6, %s1389_s26 }
 0xc30   : > { %p1398_p7 = por %p1397_p3, %p1396_p13 }
 0xc32   : > { %p1399_p9 = pnand %p1398_p7, %p1392_p10 }
 0xc9f   : > { %v988_v9 = vpop.permute.xlu0 %987 }
 0xca0   : > { %990 = vst.msk [vmem:[%s238_s10] sm:$0xff] %vm268_vm1, %v988_v9 }
 0xca1   : > { %1402 = shalt.err (!%p1399_p9)
}
 0xca2   : > { %s1403_s25 = scalar_lea.hbm %s1800_s5, 128  ;;  %s1407_s13 = scalar_lea.hbm %s1849_s4, 256 }
 0xca3   : > { %p1404_p2 = scmp.ne.s32.totalorder %s1800_s5, %s1403_s25  ;;  %p1408_p11 = scmp.lt.u32.totalorder %s1800_s5, %s1849_s4 }
 0xca4   : > { %p1409_p1 = scmp.lt.u32.totalorder %s1407_s13, %s1403_s25  ;;  %p1411_p6 = scmp.lt.u32.totalorder %s1403_s25, %s1800_s5 }
 0xca5   : > { %p1405_p5 = pnand %p1404_p2, %p1597_p12 }
 0xca6   : > { %p1410_p4 = por %p1409_p1, %p1408_p11 }
 0xca7   : > { %p1406_p0 = pneg %p1405_p5 }
 0xca8   : > { %p1412_p8 = por %p1411_p6, %p1410_p4 }
 0xcaa   : > { %p1413_p10 = pnand %p1412_p8, %p1406_p0 }
 0xcac   : > { %1416 = shalt.err (!%p1413_p10)
}
 0xcad   : > { %1241 = dma.vmem_to_hbm [thread:$0]  (%p1597_p12), %s1802_s28, 128, %s1800_s5, %s992_s7  }
 0xcae PF: > { %s1017_s9 = sand.u32 1, %s1447_s15   ;;  %p1864_p13 = scmp.ne.s32.totalorder %s1854_s22, 0 }
 0xcaf   : > { %p1865_p3 = scmp.ge.s32.totalorder %s1459_s18, 2  ;;  %s1018_s29 = scalar_lea.sflag [#allocation4], %s1017_s9 }
 0xcb1   : > { %p1252_p7 = pnand %p1865_p3, %p1864_p13 }
 0xcb3   : > { %1442 = dma.done.wait (!%p1252_p7), %s1018_s29, 128  }
 0xcb4   : > { %1444 = vsyncadd (!%p1252_p7), %s1018_s29, 4294967168  ;;  %p18_p9 = scmp.ge.s32.totalorder %s1562_s27, 4   ;;  %s1866_s15 = smov %s1451_s16 }
 0xcb5   : > { %s1867_s16 = smov %s1455_s17  ;;  %s1868_s17 = smov %s1593_s24 }
 0xcb6   : > { %s1869_s18 = smov %s1562_s27  ;;  %20 = sbr.rel (!%p18_p9) target bundleno = 6 (0x6), region = 88 }
 0xcbd   :  { %1023 = vsyncpa [#allocation3], 1 }
 0xcbe   :  { %1025 = vsyncpa [#allocation3 + $0x1], 1 }
 0xcbf   :  { %1026 = vsyncpa [#allocation6], 1 }
 0xcc0   :  { %1027 = vsyncpa [#allocation4], 1 }
 0xcc1   :  { %1029 = vsyncpa [#allocation4 + $0x1], 1 }

</bundles_post_ra>
